<compile_context>
chip_gen: v7x
topology: tpu7x:2x2x1
jax: 0.10.0
libtpu: 0.0.40
codegen_flags: <defaults>
</compile_context>

<pallas_src>
import jax
import jax.numpy as jnp
from jax import lax
from jax.experimental import pallas as pl
from jax.experimental.pallas import tpu as pltpu

N_EMBD = 64
HIDDEN = 4 * N_EMBD  # 256

SUB = 128  # rows per inner MXU step (keeps the f32 hidden tile at 32 vregs)


def _round_up(x, m):
    return (x + m - 1) // m * m


def ffn_kernel(x_ref, w1_ref, b1_ref, w2_ref, b2_ref, o_ref):
    # x_ref:  (tm, C)  f32 tile of flattened tokens
    # w1_ref: (C, H)   bf16, b1_ref: (1, H) f32
    # w2_ref: (H, C)   bf16, b2_ref: (1, C) f32
    # o_ref:  (tm, C)  f32
    n_sub = x_ref.shape[0] // SUB

    def body(i, carry):
        r = pl.multiple_of(i * SUB, SUB)
        xs = x_ref[pl.ds(r, SUB), :].astype(jnp.bfloat16)          # (SUB, C)
        h = jnp.dot(xs, w1_ref[...], preferred_element_type=jnp.float32)
        h = jnp.maximum(h + b1_ref[...], 0.0)                      # f32 bias + ReLU
        y = jnp.dot(h.astype(jnp.bfloat16), w2_ref[...],
                    preferred_element_type=jnp.float32)
        o_ref[pl.ds(r, SUB), :] = (y + b2_ref[...]).astype(o_ref.dtype)
        return carry

    # Partial unroll: LLO scheduling visibility without blowing the vreg file.
    lax.fori_loop(0, n_sub, body, 0, unroll=min(4, n_sub))


def prepare_params(w1, b1, w2, b2):
    """One-time parameter prep (bf16 weights for the MXU, f32 row biases)."""
    return (w1.astype(jnp.bfloat16),
            b1.reshape(1, -1).astype(jnp.float32),
            w2.astype(jnp.bfloat16),
            b2.reshape(1, -1).astype(jnp.float32))


def feed_forward(x, w1b, b1r, w2b, b2r, *, tm=4096):
    """x: (B, T, C) float32 -> (B, T, C) float32."""
    B, T, C = x.shape
    H = w1b.shape[1]
    M = B * T
    assert tm % SUB == 0 and tm >= SUB, "tm must be a multiple of 128"
    assert C == w1b.shape[0] and H == w2b.shape[0] and C == w2b.shape[1]

    xm = x.reshape(M, C)  # free metadata reshape, no copy / repack

    # Row tile: big enough to amortize per-grid-step overhead, small enough to
    # keep >= 2 grid tiles for v7x's two TensorCores when M allows.
    M_aligned = _round_up(M, SUB)
    tm_eff = min(tm, max(SUB, _round_up(pl.cdiv(M_aligned, 2), SUB)))
    grid = (pl.cdiv(M, tm_eff),)

    flops = 4 * M * C * H  # two matmuls
    bytes_accessed = (M * C * 4 * 2            # x in + y out (f32)
                      + w1b.size * 2 + w2b.size * 2
                      + b1r.size * 4 + b2r.size * 4)

    out = pl.pallas_call(
        ffn_kernel,
        out_shape=jax.ShapeDtypeStruct((M, C), jnp.float32),
        grid_spec=pltpu.PrefetchScalarGridSpec(
            num_scalar_prefetch=0,
            grid=grid,
            in_specs=[
                pl.BlockSpec((tm_eff, C), lambda i: (i, 0)),  # x (streamed)
                pl.BlockSpec((C, H), lambda i: (0, 0)),       # w1 (VMEM-resident)
                pl.BlockSpec((1, H), lambda i: (0, 0)),       # b1
                pl.BlockSpec((H, C), lambda i: (0, 0)),       # w2 (VMEM-resident)
                pl.BlockSpec((1, C), lambda i: (0, 0)),       # b2
            ],
            out_specs=pl.BlockSpec((tm_eff, C), lambda i: (i, 0)),
        ),
        compiler_params=pltpu.CompilerParams(
            dimension_semantics=("parallel",),
            vmem_limit_bytes=32 * 1024 * 1024),
        cost_estimate=pl.CostEstimate(
            flops=flops, transcendentals=0, bytes_accessed=bytes_accessed),
    )(xm, w1b, b1r, w2b, b2r)

    return out.reshape(B, T, C)


def init_params(key, n_embd):
    # Deterministic init mimicking PyTorch nn.Linear default U(-1/sqrt(fan_in), +).
    k1, k2, k3, k4 = jax.random.split(key, 4)
    hidden = 4 * n_embd
    lim1 = 1.0 / jnp.sqrt(n_embd)
    lim2 = 1.0 / jnp.sqrt(hidden)
    w1 = jax.random.uniform(k1, (n_embd, hidden), jnp.float32, -lim1, lim1)
    b1 = jax.random.uniform(k2, (hidden,), jnp.float32, -lim1, lim1)
    w2 = jax.random.uniform(k3, (hidden, n_embd), jnp.float32, -lim2, lim2)
    b2 = jax.random.uniform(k4, (n_embd,), jnp.float32, -lim2, lim2)
    return w1, b1, w2, b2


def _check(x, w1, b1, w2, b2, params):
    B, T, C = x.shape
    y = feed_forward(x, *params)
    jax.block_until_ready(y)
    assert y.shape == (B, T, C)

    # Pure-JAX reference emulating the kernel's bf16 matmul inputs / f32 biases
    # (eval-mode dropout = identity).
    xr = x.reshape(B * T, C).astype(jnp.bfloat16).astype(jnp.float32)
    w1r = w1.astype(jnp.bfloat16).astype(jnp.float32)
    w2r = w2.astype(jnp.bfloat16).astype(jnp.float32)
    h = jnp.maximum(xr @ w1r + b1, 0.0)
    ref = (h.astype(jnp.bfloat16).astype(jnp.float32) @ w2r + b2).reshape(B, T, C)
    assert jnp.allclose(y, ref, atol=1e-2, rtol=1e-2), "mismatch vs bf16 reference"

    # Loose sanity check against the full-precision reference too.
    ref_f32 = jnp.maximum(x @ w1 + b1, 0.0) @ w2 + b2
    assert jnp.allclose(y, ref_f32, atol=5e-2, rtol=5e-2), "mismatch vs f32 reference"


if __name__ == "__main__":
    key = jax.random.PRNGKey(0)
    kx, kx2, kp = jax.random.split(key, 3)

    w1, b1, w2, b2 = init_params(kp, N_EMBD)
    params = prepare_params(w1, b1, w2, b2)   # one-time weight prep

    # Small case (B=2, T=8): single (partial) tile.
    x = jax.random.normal(kx, (2, 8, N_EMBD), jnp.float32)
    _check(x, w1, b1, w2, b2, params)

    # Moderate case (B=3, T=100): multi-tile grid + remainder rows.
    x2 = jax.random.normal(kx2, (3, 100, N_EMBD), jnp.float32)
    _check(x2, w1, b1, w2, b2, params)

    print("KERNEL_OK")
</pallas_src>

<mosaic_0001>
module attributes {stable_mosaic.version = 11 : i64} {
  func.func @ffn_kernel(%arg0: i32, %arg1: memref<128x64xf32, #tpu.memory_space<vmem>>, %arg2: memref<64x256xbf16, #tpu.memory_space<vmem>>, %arg3: memref<1x256xf32, #tpu.memory_space<vmem>>, %arg4: memref<256x64xbf16, #tpu.memory_space<vmem>>, %arg5: memref<1x64xf32, #tpu.memory_space<vmem>>, %arg6: memref<128x64xf32, #tpu.memory_space<vmem>>) attributes {dimension_semantics = [#tpu.dimension_semantics<parallel>], iteration_bounds = array<i64: 1>, scalar_prefetch = 0 : i64, scratch_operands = 0 : i64, tpu.core_type = #tpu.core_type<tc>, window_params = [{transform_indices = @transform_0, window_bounds = array<i64: 128, 64>}, {pipeline_mode = #tpu.pipeline_mode<synchronous>, transform_indices = @transform_1, window_bounds = array<i64: 64, 256>}, {pipeline_mode = #tpu.pipeline_mode<synchronous>, transform_indices = @transform_2, window_bounds = array<i64: 1, 256>}, {pipeline_mode = #tpu.pipeline_mode<synchronous>, transform_indices = @transform_3, window_bounds = array<i64: 256, 64>}, {pipeline_mode = #tpu.pipeline_mode<synchronous>, transform_indices = @transform_4, window_bounds = array<i64: 1, 64>}, {transform_indices = @transform_5, window_bounds = array<i64: 128, 64>}]} {
    %c0_i32 = arith.constant 0 : i32
    %c128_i32 = arith.constant 128 : i32
    %0 = arith.muli %c0_i32, %c128_i32 : i32
    %1 = tpu.assume_multiple %0, 128 : i32
    %2 = arith.index_cast %1 : i32 to index
    %c0 = arith.constant 0 : index
    %3 = vector.load %arg1[%2, %c0] : memref<128x64xf32, #tpu.memory_space<vmem>>, vector<128x64xf32>
    %4 = arith.truncf %3 : vector<128x64xf32> to vector<128x64xbf16>
    %c0_0 = arith.constant 0 : index
    %c0_1 = arith.constant 0 : index
    %5 = vector.load %arg2[%c0_0, %c0_1] : memref<64x256xbf16, #tpu.memory_space<vmem>>, vector<64x256xbf16>
    %cst = arith.constant dense<0.000000e+00> : vector<128x256xf32>
    %6 = tpu.matmul %4, %5, %cst {dimension_numbers = #tpu.dot_dimension_numbers<[1], [0], [0], [1], [0, 0, 1, 1], [], []>} : vector<128x64xbf16>, vector<64x256xbf16>, vector<128x256xf32> -> vector<128x256xf32>
    %c0_2 = arith.constant 0 : index
    %c0_3 = arith.constant 0 : index
    %7 = vector.load %arg3[%c0_2, %c0_3] : memref<1x256xf32, #tpu.memory_space<vmem>>, vector<1x256xf32>
    %8 = vector.broadcast %7 : vector<1x256xf32> to vector<128x256xf32>
    %9 = arith.addf %6, %8 : vector<128x256xf32>
    %cst_4 = arith.constant 0.000000e+00 : f32
    %10 = vector.broadcast %cst_4 : f32 to vector<128x256xf32>
    %11 = arith.maximumf %9, %10 : vector<128x256xf32>
    %12 = arith.truncf %11 : vector<128x256xf32> to vector<128x256xbf16>
    %c0_5 = arith.constant 0 : index
    %c0_6 = arith.constant 0 : index
    %13 = vector.load %arg4[%c0_5, %c0_6] : memref<256x64xbf16, #tpu.memory_space<vmem>>, vector<256x64xbf16>
    %cst_7 = arith.constant dense<0.000000e+00> : vector<128x64xf32>
    %14 = tpu.matmul %12, %13, %cst_7 {dimension_numbers = #tpu.dot_dimension_numbers<[1], [0], [0], [1], [0, 0, 1, 1], [], []>} : vector<128x256xbf16>, vector<256x64xbf16>, vector<128x64xf32> -> vector<128x64xf32>
    %c0_8 = arith.constant 0 : index
    %c0_9 = arith.constant 0 : index
    %15 = vector.load %arg5[%c0_8, %c0_9] : memref<1x64xf32, #tpu.memory_space<vmem>>, vector<1x64xf32>
    %16 = vector.broadcast %15 : vector<1x64xf32> to vector<128x64xf32>
    %17 = arith.addf %14, %16 : vector<128x64xf32>
    %18 = arith.index_cast %1 : i32 to index
    %c0_10 = arith.constant 0 : index
    %19 = vector.load %arg6[%18, %c0_10] : memref<128x64xf32, #tpu.memory_space<vmem>>, vector<128x64xf32>
    tpu.vector_store %arg6[%18, %c0_10], %17 {strides = array<i32>} : memref<128x64xf32, #tpu.memory_space<vmem>>, vector<128x64xf32>,
    %c1_i32 = arith.constant 1 : i32
    return
  }
  func.func @transform_0(%arg0: i32) -> (i32, i32) {
    %c0_i32 = arith.constant 0 : i32
    %c0_i32_0 = arith.constant 0 : i32
    return %arg0, %c0_i32 : i32, i32
  }
  func.func @transform_1(%arg0: i32) -> (i32, i32) {
    %c0_i32 = arith.constant 0 : i32
    %c0_i32_0 = arith.constant 0 : i32
    %c0_i32_1 = arith.constant 0 : i32
    return %c0_i32, %c0_i32_0 : i32, i32
  }
  func.func @transform_2(%arg0: i32) -> (i32, i32) {
    %c0_i32 = arith.constant 0 : i32
    %c0_i32_0 = arith.constant 0 : i32
    %c0_i32_1 = arith.constant 0 : i32
    return %c0_i32, %c0_i32_0 : i32, i32
  }
  func.func @transform_3(%arg0: i32) -> (i32, i32) {
    %c0_i32 = arith.constant 0 : i32
    %c0_i32_0 = arith.constant 0 : i32
    %c0_i32_1 = arith.constant 0 : i32
    return %c0_i32, %c0_i32_0 : i32, i32
  }
  func.func @transform_4(%arg0: i32) -> (i32, i32) {
    %c0_i32 = arith.constant 0 : i32
    %c0_i32_0 = arith.constant 0 : i32
    %c0_i32_1 = arith.constant 0 : i32
    return %c0_i32, %c0_i32_0 : i32, i32
  }
  func.func @transform_5(%arg0: i32) -> (i32, i32) {
    %c0_i32 = arith.constant 0 : i32
    %c0_i32_0 = arith.constant 0 : i32
    return %arg0, %c0_i32 : i32, i32
  }
}

</mosaic_0001>

<bundles_post_ra>
// kernel: tpu_custom_call.1
= control target key start
LH: loop header
LB: loop body
LE: loop exit
PB: predicated region body
PF: predicated region fallthrough
CT: control target
= control target key end

     0   :  { %10 = vsyncpa [#allocation3], 0  ;;  %v725_v2 = vmov 0   ;;  %vm106_vm0 = vcmask 523264   ;;  %v56_v49 = vlaneseq  ;;  %s983_s0 = inlined_call_operand.vmem [shape: f32[16,64], index: 0, kind: input, shape index: {}]   ;;  %s984_s1 = inlined_call_operand.vmem [shape: bf16[64,256], index: 1, kind: input, shape index: {}]   ;;  %s985_s2 = inlined_call_operand.vmem [shape: f32[1,256], index: 2, kind: input, shape index: {}]   ;;  %s986_s3 = inlined_call_operand.vmem [shape: bf16[256,64], index: 3, kind: input, shape index: {}]   ;;  %s987_s4 = inlined_call_operand.vmem [shape: f32[1,64], index: 4, kind: input, shape index: {}]   ;;  %s988_s5 = inlined_call_operand.hbm [shape: f32[16,64], index: 5, kind: output, shape index: {}]  }
   0x1   :  { %v673_v0 = vld [vmem:[%s984_s1 + $0x4] ss:$8 sps:$4 sm:$0xff]   ;;  %v675_v1 = vld [vmem:[%s984_s1] ss:$8 sps:$4 sm:$0xff]   ;;  %163 = vmatprep.mubr.bf16.mxu0 %v725_v2  ;;  %v676_v3 = vld [vmem:[%s984_s1 + $0x14] ss:$8 sps:$4 sm:$0xff]  }
   0x2   :  { %131 = vmatprep.subr.bf16.mxu0 %v673_v0  ;;  %v678_v4 = vld [vmem:[%s984_s1 + $0x10] ss:$8 sps:$4 sm:$0xff]   ;;  %v679_v5 = vld [vmem:[%s984_s1 + $0x24] ss:$8 sps:$4 sm:$0xff]   ;;  %v681_v6 = vld [vmem:[%s984_s1 + $0x20] ss:$8 sps:$4 sm:$0xff]  }
   0x3   :  { %132 = vmatpush1.bf16.msra.mxu0 %v675_v1  ;;  %v682_v7 = vld [vmem:[%s984_s1 + $0x34] ss:$8 sps:$4 sm:$0xff]   ;;  %v684_v8 = vld [vmem:[%s984_s1 + $0x30] ss:$8 sps:$4 sm:$0xff]   ;;  %v22_v9 = vld [vmem:[%s983_s0] sm:$0xff]  ;;  %v57_v50 = vshrl.u32 %v56_v49, 7 }
   0x4   :  { %133 = vmatprep.subr.bf16.mxu0 %v676_v3  ;;  %v23_v10 = vld [vmem:[%s983_s0 + $0x8] sm:$0xff]  ;;  %v685_v11 = vld [vmem:[%s986_s3 + $0x40] sm:$0xff]   ;;  %v689_v16 = vld [vmem:[%s986_s3 + $0x50] sm:$0xff]  }
   0x5   :  { %v686_v12 = vld [vmem:[%s986_s3] sm:$0xff]   ;;  %v687_v13 = vld [vmem:[%s986_s3 + $0x48] sm:$0xff]   ;;  %653 = vmatprep.subr.bf16.mxu1 %v685_v11  ;;  %v38_v14 = vpack.c.bf16 %v23_v10, %v22_v9  ;;  %v24_v17 = vld [vmem:[%s983_s0 + $0x10] sm:$0xff]  ;;  %v58_v51 = vsub.s32 0, %v57_v50  ;;  %v62_v53 = vsub.s32 1, %v57_v50 }
   0x6   :  { %661 = vmatpush3.bf16.msra.mxu1 %v686_v12  ;;  %v688_v15 = vld [vmem:[%s986_s3 + $0x8] sm:$0xff]   ;;  %v25_v18 = vld [vmem:[%s983_s0 + $0x18] sm:$0xff]  ;;  %v690_v19 = vld [vmem:[%s986_s3 + $0x10] sm:$0xff]  }
   0x7   :  { %134 = vmatpush1.bf16.msra.mxu0 %v678_v4  ;;  %654 = vmatprep.subr.bf16.mxu1 %v687_v13  ;;  %v691_v20 = vld [vmem:[%s986_s3 + $0x58] sm:$0xff]   ;;  %v39_v22 = vpack.c.bf16 %v25_v18, %v24_v17  ;;  %v693_v23 = vld [vmem:[%s986_s3 + $0x60] sm:$0xff]   ;;  %v27_v25 = vld [vmem:[%s983_s0 + $0x28] sm:$0xff] }
   0x8   :  { %135 = vmatprep.subr.bf16.mxu0 %v679_v5  ;;  %v692_v21 = vld [vmem:[%s986_s3 + $0x18] sm:$0xff]   ;;  %v26_v24 = vld [vmem:[%s983_s0 + $0x20] sm:$0xff]  ;;  %v695_v27 = vld [vmem:[%s986_s3 + $0x68] sm:$0xff]  }
   0x9   :  { %v694_v26 = vld [vmem:[%s986_s3 + $0x20] sm:$0xff]   ;;  %v40_v28 = vpack.c.bf16 %v27_v25, %v26_v24  ;;  %v28_v29 = vld [vmem:[%s983_s0 + $0x30] sm:$0xff]  ;;  %v29_v30 = vld [vmem:[%s983_s0 + $0x38] sm:$0xff] }
   0xa   :  { %662 = vmatpush3.bf16.msra.mxu1 %v688_v15  ;;  %v41_v31 = vpack.c.bf16 %v29_v30, %v28_v29  ;;  %v30_v32 = vld [vmem:[%s983_s0 + $0x40] sm:$0xff]  ;;  %v31_v33 = vld [vmem:[%s983_s0 + $0x48] sm:$0xff]  ;;  %v32_v35 = vld [vmem:[%s983_s0 + $0x50] sm:$0xff] }
   0xb   :  { %136 = vmatpush1.bf16.msra.mxu0 %v681_v6  ;;  %655 = vmatprep.subr.bf16.mxu1 %v689_v16  ;;  %v42_v34 = vpack.c.bf16 %v31_v33, %v30_v32  ;;  %v33_v36 = vld [vmem:[%s983_s0 + $0x58] sm:$0xff]  ;;  %v34_v38 = vld [vmem:[%s983_s0 + $0x60] sm:$0xff]  ;;  %v35_v39 = vld [vmem:[%s983_s0 + $0x68] sm:$0xff] }
   0xc   :  { %137 = vmatprep.subr.bf16.mxu0 %v682_v7  ;;  %v43_v37 = vpack.c.bf16 %v33_v36, %v32_v35  ;;  %v44_v40 = vpack.c.bf16 %v35_v39, %v34_v38  ;;  %v36_v41 = vld [vmem:[%s983_s0 + $0x70] sm:$0xff]  ;;  %v37_v42 = vld [vmem:[%s983_s0 + $0x78] sm:$0xff]  ;;  %v696_v44 = vld [vmem:[%s986_s3 + $0x28] sm:$0xff]  }
   0xd   :  { %v45_v43 = vpack.c.bf16 %v37_v42, %v36_v41  ;;  %v697_v45 = vld [vmem:[%s986_s3 + $0x70] sm:$0xff]   ;;  %v699_v47 = vld [vmem:[%s986_s3 + $0x78] sm:$0xff]   ;;  %v54_v52 = vld [vmem:[%s985_s2] sm:$0x3] }
   0xe   :  { %663 = vmatpush3.bf16.msra.mxu1 %v690_v19  ;;  %v698_v46 = vld [vmem:[%s986_s3 + $0x30] sm:$0xff]   ;;  %v700_v48 = vld [vmem:[%s986_s3 + $0x38] sm:$0xff]   ;;  %v898_v54 = vrot.slane %v54_v52, %v58_v51  ;;  %v900_v55 = vrot.slane %v54_v52, %v62_v53 }
   0xf   :  { %138 = vmatpush1.bf16.msra.mxu0 %v684_v8  ;;  %656 = vmatprep.subr.bf16.mxu1 %v691_v20 }
  0x10   :  { %589 = vmatprep.subr.bf16.mxu0 %v685_v11 }
  0x12   :  { %564 = vmatmul.mubr.msk.bf16.vlgmr.msra.gmra.mrb[0].mxu0 %vm106_vm0, %v38_v14  ;;  %664 = vmatpush3.bf16.msra.mxu1 %v692_v21 }
  0x13   :  { %173 = vmatprep.mubr.bf16.mxu0 %v725_v2  ;;  %590 = vmatpush3.bf16.msra.mxu0 %v686_v12 }
  0x14   :  { %591 = vmatprep.subr.bf16.mxu0 %v687_v13  ;;  %657 = vmatprep.subr.bf16.mxu1 %v693_v23 }
  0x16   :  { %665 = vmatpush3.bf16.msra.mxu1 %v694_v26 }
  0x17   :  { %592 = vmatpush3.bf16.msra.mxu0 %v688_v15  ;;  %658 = vmatprep.subr.bf16.mxu1 %v695_v27 }
  0x18   :  { %593 = vmatprep.subr.bf16.mxu0 %v689_v16 }
  0x1a   :  { %565 = vmatmul.mubr.msk.bf16.gmra.mrb[4].mxu0 %vm106_vm0, %v39_v22  ;;  %666 = vmatpush3.bf16.msra.mxu1 %v696_v44 }
  0x1b   :  { %183 = vmatprep.mubr.bf16.mxu0 %v725_v2  ;;  %594 = vmatpush3.bf16.msra.mxu0 %v690_v19 }
  0x1c   :  { %595 = vmatprep.subr.bf16.mxu0 %v691_v20  ;;  %659 = vmatprep.subr.bf16.mxu1 %v697_v45 }
  0x1e   :  { %667 = vmatpush3.bf16.msra.mxu1 %v698_v46 }
  0x1f   :  { %596 = vmatpush3.bf16.msra.mxu0 %v692_v21  ;;  %660 = vmatprep.subr.bf16.mxu1 %v699_v47 }
  0x20   :  { %597 = vmatprep.subr.bf16.mxu0 %v693_v23 }
  0x22   :  { %566 = vmatmul.mubr.msk.bf16.gmra.mrb[8].mxu0 %vm106_vm0, %v40_v28  ;;  %668 = vmatpush3.bf16.msra.mxu1 %v700_v48 }
  0x23   :  { %193 = vmatprep.mubr.bf16.mxu0 %v725_v2  ;;  %598 = vmatpush3.bf16.msra.mxu0 %v694_v26 }
  0x24   :  { %599 = vmatprep.subr.bf16.mxu0 %v695_v27 }
  0x27   :  { %600 = vmatpush3.bf16.msra.mxu0 %v696_v44 }
  0x28   :  { %601 = vmatprep.subr.bf16.mxu0 %v697_v45 }
  0x2a   :  { %567 = vmatmul.mubr.msk.bf16.gmra.mrb[12].mxu0 %vm106_vm0, %v41_v31 }
  0x2b   :  { %203 = vmatprep.mubr.bf16.mxu0 %v725_v2  ;;  %602 = vmatpush3.bf16.msra.mxu0 %v698_v46 }
  0x2c   :  { %603 = vmatprep.subr.bf16.mxu0 %v699_v47 }
  0x2f   :  { %604 = vmatpush3.bf16.msra.mxu0 %v700_v48 }
  0x32   :  { %568 = vmatmul.mubr.msk.bf16.gmra.mrb[16].mxu0 %vm106_vm0, %v42_v34 }
  0x33   :  { %213 = vmatprep.mubr.bf16.mxu0 %v725_v2 }
  0x3a   :  { %569 = vmatmul.mubr.msk.bf16.gmra.mrb[20].mxu0 %vm106_vm0, %v43_v37 }
  0x3b   :  { %223 = vmatprep.mubr.bf16.mxu0 %v725_v2 }
  0x42   :  { %570 = vmatmul.mubr.msk.bf16.gmra.mrb[24].mxu0 %vm106_vm0, %v44_v40 }
  0x43   :  { %233 = vmatprep.mubr.bf16.mxu0 %v725_v2 }
  0x4a   :  { %571 = vmatmul.mubr.msk.bf16.gmra.mrb[28].mxu0 %vm106_vm0, %v45_v43 }
  0xe5   :  { %v165_v56 = vpop.f32.mrb[0].mxu0 }
  0xe6   :  { %v166_v57 = vadd.f32 %v165_v56, %v898_v54  ;;  %v167_v58 = vpop.f32.mrb[1].mxu0 }
  0xe7   :  { %v168_v59 = vadd.f32 %v167_v58, %v900_v55  ;;  %v169_v60 = vpop.f32.mrb[2].mxu0 }
  0xe8   :  { %v170_v61 = vadd.f32 %v169_v60, %v898_v54  ;;  %v171_v62 = vpop.f32.mrb[3].mxu0  ;;  %v244_v0 = vmax.f32 %v166_v57, 0.0 }
  0xe9   :  { %v172_v63 = vadd.f32 %v171_v62, %v900_v55  ;;  %v245_v2 = vmax.f32 %v168_v59, 0.0 }
  0xea   :  { %v246_v1 = vmax.f32 %v170_v61, 0.0 }
  0xeb   :  { %v247_v3 = vmax.f32 %v172_v63, 0.0 }
  0xec   :  { %v276_v4 = vpack.c.bf16 %v246_v1, %v244_v0 }
  0xed   :  { %v277_v5 = vpack.c.bf16 %v247_v3, %v245_v2  ;;  %v175_v6 = vpop.f32.mrb[4].mxu0 }
  0xee   :  { %v176_v7 = vadd.f32 %v175_v6, %v898_v54  ;;  %v177_v8 = vpop.f32.mrb[5].mxu0 }
  0xef   :  { %v178_v9 = vadd.f32 %v177_v8, %v900_v55  ;;  %v179_v10 = vpop.f32.mrb[6].mxu0  ;;  %459 = vmatprep.mubr.bf16.mxu0 %v277_v5 }
  0xf0   :  { %v180_v11 = vadd.f32 %v179_v10, %v898_v54  ;;  %v181_v12 = vpop.f32.mrb[7].mxu0  ;;  %460 = vmatmul.mubr.bf16.vlgmr.msra.gmra.mrb[32].mxu0 %v276_v4  ;;  %v248_v14 = vmax.f32 %v176_v7, 0.0 }
  0xf1   :  { %v182_v13 = vadd.f32 %v181_v12, %v900_v55  ;;  %v249_v16 = vmax.f32 %v178_v9, 0.0 }
  0xf2   :  { %v250_v15 = vmax.f32 %v180_v11, 0.0 }
  0xf3   :  { %v251_v17 = vmax.f32 %v182_v13, 0.0 }
  0xf4   :  { %v278_v18 = vpack.c.bf16 %v250_v15, %v248_v14 }
  0xf5   :  { %v185_v19 = vpop.f32.mrb[8].mxu0  ;;  %v279_v20 = vpack.c.bf16 %v251_v17, %v249_v16 }
  0xf6   :  { %v186_v21 = vadd.f32 %v185_v19, %v898_v54  ;;  %v187_v22 = vpop.f32.mrb[9].mxu0 }
  0xf7   :  { %v188_v23 = vadd.f32 %v187_v22, %v900_v55  ;;  %v189_v24 = vpop.f32.mrb[10].mxu0  ;;  %467 = vmatprep.mubr.bf16.mxu1 %v279_v20 }
  0xf8   :  { %v190_v25 = vadd.f32 %v189_v24, %v898_v54  ;;  %v191_v26 = vpop.f32.mrb[11].mxu0  ;;  %468 = vmatmul.mubr.bf16.vlgmr.msra.gmra.mrb[0].mxu1 %v278_v18  ;;  %v252_v28 = vmax.f32 %v186_v21, 0.0 }
  0xf9   :  { %v192_v27 = vadd.f32 %v191_v26, %v900_v55  ;;  %v253_v30 = vmax.f32 %v188_v23, 0.0 }
  0xfa   :  { %v254_v29 = vmax.f32 %v190_v25, 0.0 }
  0xfb   :  { %v255_v31 = vmax.f32 %v192_v27, 0.0 }
  0xfc   :  { %v280_v32 = vpack.c.bf16 %v254_v29, %v252_v28 }
  0xfd   :  { %v281_v33 = vpack.c.bf16 %v255_v31, %v253_v30  ;;  %v195_v34 = vpop.f32.mrb[12].mxu0 }
  0xfe   :  { %v196_v35 = vadd.f32 %v195_v34, %v898_v54  ;;  %v197_v36 = vpop.f32.mrb[13].mxu0 }
  0xff   :  { %v198_v37 = vadd.f32 %v197_v36, %v900_v55  ;;  %v199_v38 = vpop.f32.mrb[14].mxu0  ;;  %475 = vmatprep.mubr.bf16.mxu1 %v281_v33 }
 0x100   :  { %v200_v39 = vadd.f32 %v199_v38, %v898_v54  ;;  %v201_v40 = vpop.f32.mrb[15].mxu0  ;;  %476 = vmatmul.mubr.bf16.gmra.mrb[4].mxu1 %v280_v32  ;;  %v256_v42 = vmax.f32 %v196_v35, 0.0 }
 0x101   :  { %v202_v41 = vadd.f32 %v201_v40, %v900_v55  ;;  %v257_v44 = vmax.f32 %v198_v37, 0.0 }
 0x102   :  { %v258_v43 = vmax.f32 %v200_v39, 0.0 }
 0x103   :  { %v259_v45 = vmax.f32 %v202_v41, 0.0 }
 0x104   :  { %v282_v46 = vpack.c.bf16 %v258_v43, %v256_v42  ;;  %v937_v43 = vld [vmem:[%s987_s4] ss:$0 sm:$0xff] }
 0x105   :  { %v283_v47 = vpack.c.bf16 %v259_v45, %v257_v44  ;;  %v205_v48 = vpop.f32.mrb[16].mxu0 }
 0x106   :  { %v206_v49 = vadd.f32 %v205_v48, %v898_v54  ;;  %v207_v50 = vpop.f32.mrb[17].mxu0 }
 0x107   :  { %v208_v51 = vadd.f32 %v207_v50, %v900_v55  ;;  %v209_v52 = vpop.f32.mrb[18].mxu0  ;;  %483 = vmatprep.mubr.bf16.mxu1 %v283_v47 }
 0x108   :  { %v210_v53 = vadd.f32 %v209_v52, %v898_v54  ;;  %v211_v56 = vpop.f32.mrb[19].mxu0  ;;  %484 = vmatmul.mubr.bf16.gmra.mrb[8].mxu1 %v282_v46  ;;  %v260_v58 = vmax.f32 %v206_v49, 0.0 }
 0x109   :  { %v212_v57 = vadd.f32 %v211_v56, %v900_v55  ;;  %v261_v60 = vmax.f32 %v208_v51, 0.0 }
 0x10a   :  { %v262_v59 = vmax.f32 %v210_v53, 0.0 }
 0x10b   :  { %v263_v61 = vmax.f32 %v212_v57, 0.0 }
 0x10c   :  { %v284_v62 = vpack.c.bf16 %v262_v59, %v260_v58 }
 0x10d   :  { %v285_v63 = vpack.c.bf16 %v263_v61, %v261_v60  ;;  %v215_v0 = vpop.f32.mrb[20].mxu0 }
 0x10e   :  { %v216_v1 = vadd.f32 %v215_v0, %v898_v54  ;;  %v217_v2 = vpop.f32.mrb[21].mxu0 }
 0x10f   :  { %v218_v3 = vadd.f32 %v217_v2, %v900_v55  ;;  %v219_v4 = vpop.f32.mrb[22].mxu0  ;;  %491 = vmatprep.mubr.bf16.mxu1 %v285_v63 }
 0x110   :  { %v220_v5 = vadd.f32 %v219_v4, %v898_v54  ;;  %v221_v6 = vpop.f32.mrb[23].mxu0  ;;  %492 = vmatmul.mubr.bf16.gmra.mrb[12].mxu1 %v284_v62  ;;  %v264_v8 = vmax.f32 %v216_v1, 0.0 }
 0x111   :  { %v222_v7 = vadd.f32 %v221_v6, %v900_v55  ;;  %v265_v10 = vmax.f32 %v218_v3, 0.0 }
 0x112   :  { %v266_v9 = vmax.f32 %v220_v5, 0.0 }
 0x113   :  { %v267_v11 = vmax.f32 %v222_v7, 0.0 }
 0x114   :  { %v286_v12 = vpack.c.bf16 %v266_v9, %v264_v8 }
 0x115   :  { %v287_v13 = vpack.c.bf16 %v267_v11, %v265_v10  ;;  %v225_v14 = vpop.f32.mrb[24].mxu0 }
 0x116   :  { %v226_v15 = vadd.f32 %v225_v14, %v898_v54  ;;  %v227_v16 = vpop.f32.mrb[25].mxu0 }
 0x117   :  { %v228_v17 = vadd.f32 %v227_v16, %v900_v55  ;;  %v229_v18 = vpop.f32.mrb[26].mxu0  ;;  %499 = vmatprep.mubr.bf16.mxu1 %v287_v13 }
 0x118   :  { %v230_v19 = vadd.f32 %v229_v18, %v898_v54  ;;  %v231_v20 = vpop.f32.mrb[27].mxu0  ;;  %500 = vmatmul.mubr.bf16.gmra.mrb[16].mxu1 %v286_v12  ;;  %v268_v22 = vmax.f32 %v226_v15, 0.0 }
 0x119   :  { %v232_v21 = vadd.f32 %v231_v20, %v900_v55  ;;  %v269_v24 = vmax.f32 %v228_v17, 0.0 }
 0x11a   :  { %v270_v23 = vmax.f32 %v230_v19, 0.0 }
 0x11b   :  { %v271_v25 = vmax.f32 %v232_v21, 0.0 }
 0x11c   :  { %v288_v26 = vpack.c.bf16 %v270_v23, %v268_v22 }
 0x11d   :  { %v289_v27 = vpack.c.bf16 %v271_v25, %v269_v24  ;;  %v235_v28 = vpop.f32.mrb[28].mxu0 }
 0x11e   :  { %v236_v29 = vadd.f32 %v235_v28, %v898_v54  ;;  %v237_v30 = vpop.f32.mrb[29].mxu0 }
 0x11f   :  { %v238_v31 = vadd.f32 %v237_v30, %v900_v55  ;;  %v239_v32 = vpop.f32.mrb[30].mxu0  ;;  %507 = vmatprep.mubr.bf16.mxu1 %v289_v27 }
 0x120   :  { %v240_v33 = vadd.f32 %v239_v32, %v898_v54  ;;  %v241_v34 = vpop.f32.mrb[31].mxu0  ;;  %508 = vmatmul.mubr.bf16.gmra.mrb[20].mxu1 %v288_v26  ;;  %v272_v36 = vmax.f32 %v236_v29, 0.0 }
 0x121   :  { %v242_v35 = vadd.f32 %v241_v34, %v900_v55  ;;  %v273_v38 = vmax.f32 %v238_v31, 0.0 }
 0x122   :  { %v274_v37 = vmax.f32 %v240_v33, 0.0 }
 0x123   :  { %v275_v39 = vmax.f32 %v242_v35, 0.0 }
 0x124   :  { %v290_v40 = vpack.c.bf16 %v274_v37, %v272_v36 }
 0x125   :  { %v291_v41 = vpack.c.bf16 %v275_v39, %v273_v38 }
 0x127   :  { %515 = vmatprep.mubr.bf16.mxu1 %v291_v41 }
 0x128   :  { %516 = vmatmul.mubr.bf16.gmra.mrb[24].mxu1 %v290_v40 }
 0x1c3   :  { %v605_v42 = vpop.f32.mrb[32].mxu0 }
 0x1c4   :  { %v606_v44 = vpop.f32.mrb[33].mxu0 }
 0x1c5   :  { %v607_v54 = vadd.f32 %v606_v44, %v605_v42  ;;  %v608_v45 = vpop.f32.mrb[34].mxu0 }
 0x1c6   :  { %v609_v46 = vpop.f32.mrb[35].mxu0 }
 0x1c7   :  { %v462_v55 = vadd.f32 %v607_v54, %v937_v43  ;;  %v610_v47 = vadd.f32 %v609_v46, %v608_v45 }
 0x1c9   :  { %524 = vst.msk [vmem:[#allocation2] sm:$0xff] %vm106_vm0, %v462_v55  ;;  %v465_v48 = vadd.f32 %v610_v47, %v937_v43 }
 0x1cb   :  { %525 = vst.msk [vmem:[#allocation2 + $0x8] sm:$0xff] %vm106_vm0, %v465_v48  ;;  %v611_v49 = vpop.f32.mrb[0].mxu1 }
 0x1cc   :  { %v612_v50 = vpop.f32.mrb[1].mxu1 }
 0x1cd   :  { %v613_v51 = vadd.f32 %v612_v50, %v611_v49  ;;  %v614_v52 = vpop.f32.mrb[2].mxu1 }
 0x1ce   :  { %v615_v53 = vpop.f32.mrb[3].mxu1 }
 0x1cf   :  { %v470_v56 = vadd.f32 %v613_v51, %v937_v43  ;;  %v616_v57 = vadd.f32 %v615_v53, %v614_v52 }
 0x1d1   :  { %526 = vst.msk [vmem:[#allocation2 + $0x10] sm:$0xff] %vm106_vm0, %v470_v56  ;;  %v473_v58 = vadd.f32 %v616_v57, %v937_v43 }
 0x1d3   :  { %527 = vst.msk [vmem:[#allocation2 + $0x18] sm:$0xff] %vm106_vm0, %v473_v58  ;;  %v617_v59 = vpop.f32.mrb[4].mxu1 }
 0x1d4   :  { %v618_v60 = vpop.f32.mrb[5].mxu1 }
 0x1d5   :  { %v619_v61 = vadd.f32 %v618_v60, %v617_v59  ;;  %v620_v62 = vpop.f32.mrb[6].mxu1 }
 0x1d6   :  { %v621_v63 = vpop.f32.mrb[7].mxu1 }
 0x1d7   :  { %v478_v0 = vadd.f32 %v619_v61, %v937_v43  ;;  %v622_v1 = vadd.f32 %v621_v63, %v620_v62 }
 0x1d9   :  { %528 = vst.msk [vmem:[#allocation2 + $0x20] sm:$0xff] %vm106_vm0, %v478_v0  ;;  %v481_v2 = vadd.f32 %v622_v1, %v937_v43 }
 0x1db   :  { %529 = vst.msk [vmem:[#allocation2 + $0x28] sm:$0xff] %vm106_vm0, %v481_v2  ;;  %v623_v3 = vpop.f32.mrb[8].mxu1 }
 0x1dc   :  { %v624_v4 = vpop.f32.mrb[9].mxu1 }
 0x1dd   :  { %v625_v5 = vadd.f32 %v624_v4, %v623_v3  ;;  %v626_v6 = vpop.f32.mrb[10].mxu1 }
 0x1de   :  { %v627_v7 = vpop.f32.mrb[11].mxu1 }
 0x1df   :  { %v486_v8 = vadd.f32 %v625_v5, %v937_v43  ;;  %v628_v9 = vadd.f32 %v627_v7, %v626_v6 }
 0x1e1   :  { %530 = vst.msk [vmem:[#allocation2 + $0x30] sm:$0xff] %vm106_vm0, %v486_v8  ;;  %v489_v10 = vadd.f32 %v628_v9, %v937_v43 }
 0x1e3   :  { %531 = vst.msk [vmem:[#allocation2 + $0x38] sm:$0xff] %vm106_vm0, %v489_v10  ;;  %v629_v11 = vpop.f32.mrb[12].mxu1 }
 0x1e4   :  { %v630_v12 = vpop.f32.mrb[13].mxu1 }
 0x1e5   :  { %v631_v13 = vadd.f32 %v630_v12, %v629_v11  ;;  %v632_v14 = vpop.f32.mrb[14].mxu1 }
 0x1e6   :  { %v633_v15 = vpop.f32.mrb[15].mxu1 }
 0x1e7   :  { %v494_v16 = vadd.f32 %v631_v13, %v937_v43  ;;  %v634_v17 = vadd.f32 %v633_v15, %v632_v14 }
 0x1e9   :  { %532 = vst.msk [vmem:[#allocation2 + $0x40] sm:$0xff] %vm106_vm0, %v494_v16  ;;  %v497_v18 = vadd.f32 %v634_v17, %v937_v43 }
 0x1eb   :  { %533 = vst.msk [vmem:[#allocation2 + $0x48] sm:$0xff] %vm106_vm0, %v497_v18  ;;  %v635_v19 = vpop.f32.mrb[16].mxu1 }
 0x1ec   :  { %v636_v20 = vpop.f32.mrb[17].mxu1 }
 0x1ed   :  { %v637_v21 = vadd.f32 %v636_v20, %v635_v19  ;;  %v638_v22 = vpop.f32.mrb[18].mxu1 }
 0x1ee   :  { %v639_v23 = vpop.f32.mrb[19].mxu1 }
 0x1ef   :  { %v502_v24 = vadd.f32 %v637_v21, %v937_v43  ;;  %v640_v25 = vadd.f32 %v639_v23, %v638_v22 }
 0x1f1   :  { %534 = vst.msk [vmem:[#allocation2 + $0x50] sm:$0xff] %vm106_vm0, %v502_v24  ;;  %v505_v26 = vadd.f32 %v640_v25, %v937_v43 }
 0x1f3   :  { %535 = vst.msk [vmem:[#allocation2 + $0x58] sm:$0xff] %vm106_vm0, %v505_v26  ;;  %v641_v27 = vpop.f32.mrb[20].mxu1 }
 0x1f4   :  { %v642_v28 = vpop.f32.mrb[21].mxu1 }
 0x1f5   :  { %v643_v29 = vadd.f32 %v642_v28, %v641_v27  ;;  %v644_v30 = vpop.f32.mrb[22].mxu1 }
 0x1f6   :  { %v645_v31 = vpop.f32.mrb[23].mxu1 }
 0x1f7   :  { %v510_v32 = vadd.f32 %v643_v29, %v937_v43  ;;  %v646_v33 = vadd.f32 %v645_v31, %v644_v30 }
 0x1f9   :  { %536 = vst.msk [vmem:[#allocation2 + $0x60] sm:$0xff] %vm106_vm0, %v510_v32  ;;  %v513_v34 = vadd.f32 %v646_v33, %v937_v43 }
 0x1fb   :  { %537 = vst.msk [vmem:[#allocation2 + $0x68] sm:$0xff] %vm106_vm0, %v513_v34  ;;  %v647_v35 = vpop.f32.mrb[24].mxu1 }
 0x1fc   :  { %v648_v36 = vpop.f32.mrb[25].mxu1 }
 0x1fd   :  { %v649_v37 = vadd.f32 %v648_v36, %v647_v35  ;;  %v650_v38 = vpop.f32.mrb[26].mxu1 }
 0x1fe   :  { %v651_v39 = vpop.f32.mrb[27].mxu1 }
 0x1ff   :  { %v518_v40 = vadd.f32 %v649_v37, %v937_v43  ;;  %v652_v41 = vadd.f32 %v651_v39, %v650_v38 }
 0x201   :  { %538 = vst.msk [vmem:[#allocation2 + $0x70] sm:$0xff] %vm106_vm0, %v518_v40  ;;  %v521_v42 = vadd.f32 %v652_v41, %v937_v43 }
 0x203   :  { %539 = vst.msk [vmem:[#allocation2 + $0x78] sm:$0xff] %vm106_vm0, %v521_v42 }
 0x204   :  { %544 = vsyncadd [#allocation3], 1792  ;;  %s726_s4 = smov [#allocation2]  }
 0x205   :  { %s545_s21 = sshll.u32 %s726_s4, 4  ;;  %s546_s21 = int_to_ptr.vmem [resolvable:$true] %s545_s21 }
 0x206   :  { %s701_s22 = scalar_lea.vmem %s546_s21, 256  ;;  %s705_s23 = scalar_lea.vmem %s546_s21, 2048 }
 0x207   :  { %p702_p0 = scmp.ne.s32.totalorder %s546_s21, %s701_s22  ;;  %p706_p1 = scmp.lt.s32.totalorder %s546_s21, %s546_s21 }
 0x208   :  { %p707_p2 = scmp.lt.s32.totalorder %s705_s23, %s701_s22 }
 0x20a   :  { %p708_p3 = por %p707_p2, %p706_p1 }
 0x20c   :  { %p709_p4 = pnand %p708_p3, %p702_p0 }
 0x20e   :  { %712 = shalt.err (!%p709_p4)
}
 0x20f   :  { %s713_s26 = scalar_lea.hbm %s988_s5, 256 }
 0x210   :  { %p714_p5 = scmp.ne.s32.totalorder %s988_s5, %s713_s26  ;;  %p717_p6 = scmp.lt.u32.totalorder %s713_s26, %s988_s5 }
 0x212   :  { %p719_p7 = pnand %p717_p6, %p714_p5 }
 0x214   :  { %722 = shalt.err (!%p719_p7)
}
 0x215   :  { %s727_s6 = smov 128   ;;  %s728_s7 = smov 8  }
 0x216   :  { %551 = dma.vmem_to_hbm [thread:$0]  %s546_s21, 256, %s988_s5, [#allocation3], %s727_s6, %s727_s6, %s728_s7  }
 0x217   :  { %723 = dma.done.wait [#allocation3], 2048  }
 0x218   :  { %724 = vsyncadd [#allocation3], 4294965248 }
 0x219   :  { %555 = vsyncpa [#allocation3], 1 }

</bundles_post_ra>
